<compile_context>
chip_gen: v7x
topology: tpu7x:2x2x1
jax: 0.10.0
libtpu: 0.0.40
codegen_flags: <defaults>
</compile_context>

<pallas_src>
import functools

import jax
import jax.numpy as jnp
import numpy as np
from jax.experimental import pallas as pl
from jax.experimental.pallas import tpu as pltpu


def _attn_kernel(q_ref, ctx_ref, win_t_ref, watt_t_ref, wq_t_ref,
                 out_ref, attnw_ref,
                 qg_sc, m_sc, l_sc, acc_sc, *, ts, s_actual):
    # q_ref     : (tb, D)        batch tile of queries
    # ctx_ref   : (ts, tb, D)    context tile in NATIVE (S, B, D) layout
    # w*_ref    : (D, D)         W_in^T and the two halves of W_out^T (replicated)
    # out_ref   : (tb, D)        resident across the S axis
    # attnw_ref : (sp, tb)       resident across the S axis (S-major, batch on lanes)
    si = pl.program_id(1)
    n_s = pl.num_programs(1)

    @pl.when(si == 0)
    def _init():
        # linear_in once per batch tile (M = tb MXU matmul), cached in VMEM scratch.
        qg_sc[...] = jnp.dot(q_ref[...], win_t_ref[...],
                             preferred_element_type=jnp.float32)
        m_sc[...] = jnp.full_like(m_sc, -1e30)
        l_sc[...] = jnp.zeros_like(l_sc)
        acc_sc[...] = jnp.zeros_like(acc_sc)

    ctx = ctx_ref[...].astype(jnp.float32)            # (ts, tb, D)
    qg = qg_sc[...]                                   # (tb, D) f32

    # Attention scores for this S tile (query length == 1):
    # VPU broadcast-multiply + lane reduce over D -> (ts, tb).  No MXU, no transpose.
    s_chunk = jnp.sum(ctx * qg[None, :, :], axis=-1)

    # Mask padded S rows (only the last tile can contain padding).
    s_idx = si * ts + jax.lax.broadcasted_iota(jnp.int32, s_chunk.shape, 0)
    s_chunk = jnp.where(s_idx < s_actual, s_chunk, -1e30)

    # Stage raw scores into the resident attention-weight block (doubles as scratch);
    # they are exp-normalized once at the last S step with the final m/l.
    off = pl.multiple_of(si * ts, ts)
    attnw_ref[pl.ds(off, ts), :] = s_chunk.astype(attnw_ref.dtype)

    # Online-softmax accumulation of the attended context (f32 throughout).
    m_prev = m_sc[...]                                              # (1, tb)
    m_new = jnp.maximum(m_prev, jnp.max(s_chunk, axis=0, keepdims=True))
    alpha = jnp.exp(m_prev - m_new)                                 # (1, tb)
    p = jnp.exp(s_chunk - m_new)                                    # (ts, tb)
    l_sc[...] = alpha * l_sc[...] + jnp.sum(p, axis=0, keepdims=True)
    # Row-vector (1, tb) rescale of the (tb, D) accumulator is expressed with the same
    # broadcast pattern as p * ctx (avoids an explicit lane->sublane vector transpose).
    acc_sc[...] = (jnp.sum(alpha[:, :, None] * acc_sc[...][None, :, :], axis=0)
                   + jnp.sum(p[:, :, None] * ctx, axis=0))
    m_sc[...] = m_new

    @pl.when(si == n_s - 1)
    def _finalize():
        l = l_sc[...]
        inv_l = pl.reciprocal(l, approx=True)           # EUP slot
        inv_l = inv_l * (2.0 - l * inv_l)               # one Newton step -> ~f32 exact

        # Final attention weights from the staged raw scores (padded rows -> exp -> 0).
        raw = attnw_ref[...].astype(jnp.float32)                       # (sp, tb)
        attnw_ref[...] = (jnp.exp(raw - m_sc[...]) * inv_l).astype(attnw_ref.dtype)

        # Attended context, then linear_out as two full-K, M=tb MXU matmuls
        # (W_out^T pre-split in the wrapper -> no in-kernel concat / sublane slicing).
        att = jnp.sum(inv_l[:, :, None] * acc_sc[...][None, :, :], axis=0)   # (tb, D)
        out = (jnp.dot(att, watt_t_ref[...], preferred_element_type=jnp.float32)
               + jnp.dot(qg, wq_t_ref[...], preferred_element_type=jnp.float32))
        out_ref[...] = out.astype(out_ref.dtype)


def _round_up(x, m):
    return (x + m - 1) // m * m


@functools.partial(jax.jit, static_argnames=("stream_dtype",))
def attn_forward(query, context, w_in, w_out, stream_dtype=None):
    """Mirrors Attn.forward with attention_type='general'.

    query   : (B, D)
    context : (S, B, D)   native seq-first layout; consumed WITHOUT a host transpose
    w_in    : (D, D)      PyTorch linear_in.weight
    w_out   : (D, 2D)     PyTorch linear_out.weight
    stream_dtype : optional dtype (e.g. jnp.bfloat16) for the context/weight DMA stream
                   (recommended on v6e/v7x); softmax and accumulation stay f32.
    returns : (output (B, 1, D), attention_weights (B, 1, S))
    """
    B, D = query.shape
    S = context.shape[0]
    out_dtype = query.dtype

    # One-time weight prep: transpose + split W_out^T so linear_out(concat([att, qg]))
    # becomes two full-K MXU matmuls inside the kernel.
    w_in_t = w_in.T                      # (D, D)
    w_out_t = w_out.T                    # (2D, D)
    w_att_t = w_out_t[:D, :]             # acts on the attended context
    w_q_t = w_out_t[D:, :]               # acts on the transformed query

    if stream_dtype is not None:
        # Halve the dominant DMA stream (context) and the weights; compute stays f32.
        # TODO(synk): in a real pipeline, store the context in bf16 upstream so this cast
        # does not itself cost an HBM round-trip.
        context = context.astype(stream_dtype)
        w_in_t = w_in_t.astype(stream_dtype)
        w_att_t = w_att_t.astype(stream_dtype)
        w_q_t = w_q_t.astype(stream_dtype)

    # ---- batch tiling -------------------------------------------------------
    # tb is the sublane dim of the ctx block and the lane dim of the attention-weight
    # block, so it must be a multiple of 8 / 128 respectively unless it spans the whole
    # (padded) batch.  tb=128 also fills the v5e MXU M and gives v7x's two TensorCores
    # >= 2 "parallel" grid steps once B > 128, while never padding more than 127 rows.
    if B <= 128:
        tb = _round_up(B, 8)
        bp = tb
    else:
        tb = 128
        bp = _round_up(B, tb)

    # ---- S tiling -----------------------------------------------------------
    # Keep one (ts, tb, D) context block around <= ~4 MiB so the double-buffered context
    # stream plus its broadcast temporaries stay well inside the VMEM budget below.
    ctx_itemsize = jnp.dtype(context.dtype).itemsize
    ts_cap = max(8, (4 * 1024 * 1024) // max(1, tb * D * ctx_itemsize) // 8 * 8)
    ts = min(_round_up(S, 8), ts_cap)
    sp = _round_up(S, ts)

    pad_b = bp - B
    pad_s = sp - S
    q_p = jnp.pad(query, ((0, pad_b), (0, 0))) if pad_b else query
    ctx_p = (jnp.pad(context, ((0, pad_s), (0, pad_b), (0, 0)))
             if (pad_b or pad_s) else context)

    kernel = functools.partial(_attn_kernel, ts=ts, s_actual=S)

    grid_spec = pltpu.PrefetchScalarGridSpec(
        num_scalar_prefetch=0,
        grid=(bp // tb, sp // ts),                            # batch tiles x S tiles (S innermost)
        in_specs=[
            pl.BlockSpec((tb, D), lambda b, s: (b, 0)),          # query tile
            pl.BlockSpec((ts, tb, D), lambda b, s: (s, b, 0)),   # context, NATIVE (S, B, D)
            pl.BlockSpec((D, D), lambda b, s: (0, 0)),           # W_in^T  (replicated)
            pl.BlockSpec((D, D), lambda b, s: (0, 0)),           # W_att^T (replicated)
            pl.BlockSpec((D, D), lambda b, s: (0, 0)),           # W_q^T   (replicated)
        ],
        out_specs=[
            pl.BlockSpec((tb, D), lambda b, s: (b, 0)),          # output slab, resident over S
            pl.BlockSpec((sp, tb), lambda b, s: (0, b)),         # attn weights (S-major), resident
        ],
        scratch_shapes=[
            pltpu.VMEM((tb, D), jnp.float32),    # qg  = query @ W_in^T
            pltpu.VMEM((1, tb), jnp.float32),    # m   (running max)
            pltpu.VMEM((1, tb), jnp.float32),    # l   (running denominator)
            pltpu.VMEM((tb, D), jnp.float32),    # acc (running attended context)
        ],
    )

    out2d, attnw_sb = pl.pallas_call(
        kernel,
        out_shape=(
            jax.ShapeDtypeStruct((bp, D), out_dtype),
            jax.ShapeDtypeStruct((sp, bp), out_dtype),
        ),
        grid_spec=grid_spec,
        compiler_params=pltpu.CompilerParams(
            dimension_semantics=("parallel", "arbitrary"),
            vmem_limit_bytes=48 * 1024 * 1024,
        ),
    )(q_p, ctx_p, w_in_t, w_att_t, w_q_t)

    # Back to the PyTorch output shapes; only the tiny (S, B) weight slab is transposed.
    output = out2d[:B, None, :]
    attention_weights = jnp.transpose(attnw_sb[:S, :B])[:, None, :]
    return output, attention_weights


def _reference(query, context, w_in, w_out):
    # float64 NumPy replica of the PyTorch forward (precision-independent reference).
    q = np.asarray(query, np.float64)[:, None, :]              # (B, 1, D)
    ctx = np.asarray(context, np.float64).transpose(1, 0, 2)   # (B, S, D)
    w_in = np.asarray(w_in, np.float64)
    w_out = np.asarray(w_out, np.float64)
    qg = q @ w_in.T                                            # (B, 1, D)
    scores = np.einsum("bod,bsd->bos", qg, ctx)                # (B, 1, S)
    scores = scores - scores.max(axis=-1, keepdims=True)
    e = np.exp(scores)
    w = e / e.sum(axis=-1, keepdims=True)                      # (B, 1, S)
    att = np.einsum("bos,bsd->bod", w, ctx)                    # (B, 1, D)
    combined = np.concatenate([att, qg], axis=-1)              # (B, 1, 2D)
    out = combined @ w_out.T                                   # (B, 1, D)
    return out, w


if __name__ == "__main__":
    B, S, D = 2, 8, 32   # batch, context length, hidden dimension

    key = jax.random.PRNGKey(0)
    k1, k2, k3, k4 = jax.random.split(key, 4)
    query = jax.random.normal(k1, (B, D), dtype=jnp.float32)
    context = jax.random.normal(k2, (S, B, D), dtype=jnp.float32)
    # deterministic synthetic parameters (nn.Linear shapes: (out_features, in_features))
    w_in = jax.random.normal(k3, (D, D), dtype=jnp.float32) * 0.1
    w_out = jax.random.normal(k4, (D, 2 * D), dtype=jnp.float32) * 0.1

    # f32 streaming path.
    out, attn_w = attn_forward(query, context, w_in, w_out)
    out, attn_w = jax.block_until_ready((out, attn_w))
    ref_out, ref_w = _reference(query, context, w_in, w_out)
    assert out.shape == (B, 1, D) and attn_w.shape == (B, 1, S)
    # Tolerance accommodates MXU matmul pass precision for f32 operands.
    assert np.allclose(np.asarray(out), ref_out, atol=2e-2, rtol=2e-2), \
        float(np.max(np.abs(np.asarray(out) - ref_out)))
    assert np.allclose(np.asarray(attn_w), ref_w, atol=2e-2, rtol=2e-2), \
        float(np.max(np.abs(np.asarray(attn_w) - ref_w)))

    # bf16 streaming path (recommended on v6e/v7x): compare against a reference that sees
    # the same bf16-rounded context/weights (compute stays f32 in both).
    out_bf, attn_w_bf = attn_forward(query, context, w_in, w_out,
                                     stream_dtype=jnp.bfloat16)
    out_bf, attn_w_bf = jax.block_until_ready((out_bf, attn_w_bf))
    ref_out_bf, ref_w_bf = _reference(
        query,
        context.astype(jnp.bfloat16).astype(jnp.float32),
        w_in.astype(jnp.bfloat16).astype(jnp.float32),
        w_out.astype(jnp.bfloat16).astype(jnp.float32))
    assert np.allclose(np.asarray(out_bf), ref_out_bf, atol=2e-2, rtol=2e-2), \
        float(np.max(np.abs(np.asarray(out_bf) - ref_out_bf)))
    assert np.allclose(np.asarray(attn_w_bf), ref_w_bf, atol=2e-2, rtol=2e-2), \
        float(np.max(np.abs(np.asarray(attn_w_bf) - ref_w_bf)))

    print("KERNEL_OK")
</pallas_src>

<mosaic_0001>
module attributes {stable_mosaic.version = 11 : i64} {
  func.func @_attn_kernel(%arg0: i32, %arg1: i32, %arg2: memref<8x32xf32, #tpu.memory_space<vmem>>, %arg3: memref<8x8x32xf32, #tpu.memory_space<vmem>>, %arg4: memref<32x32xf32, #tpu.memory_space<vmem>>, %arg5: memref<32x32xf32, #tpu.memory_space<vmem>>, %arg6: memref<32x32xf32, #tpu.memory_space<vmem>>, %arg7: memref<8x32xf32, #tpu.memory_space<vmem>>, %arg8: memref<8x8xf32, #tpu.memory_space<vmem>>, %arg9: memref<8x32xf32, #tpu.memory_space<vmem>>, %arg10: memref<1x8xf32, #tpu.memory_space<vmem>>, %arg11: memref<1x8xf32, #tpu.memory_space<vmem>>, %arg12: memref<8x32xf32, #tpu.memory_space<vmem>>) attributes {dimension_semantics = [#tpu.dimension_semantics<parallel>, #tpu.dimension_semantics<arbitrary>], iteration_bounds = array<i64: 1, 1>, scalar_prefetch = 0 : i64, scratch_operands = 4 : i64, tpu.core_type = #tpu.core_type<tc>, window_params = [{transform_indices = @transform_0, window_bounds = array<i64: 8, 32>}, {transform_indices = @transform_1, window_bounds = array<i64: 8, 8, 32>}, {pipeline_mode = #tpu.pipeline_mode<synchronous>, transform_indices = @transform_2, window_bounds = array<i64: 32, 32>}, {pipeline_mode = #tpu.pipeline_mode<synchronous>, transform_indices = @transform_3, window_bounds = array<i64: 32, 32>}, {pipeline_mode = #tpu.pipeline_mode<synchronous>, transform_indices = @transform_4, window_bounds = array<i64: 32, 32>}, {transform_indices = @transform_5, window_bounds = array<i64: 8, 32>}, {transform_indices = @transform_6, window_bounds = array<i64: 8, 8>}]} {
    %c0_i32 = arith.constant 0 : i32
    %0 = arith.cmpi eq, %arg1, %c0_i32 : i32
    %1 = arith.extui %0 : i1 to i32
    %c0_i32_0 = arith.constant 0 : i32
    %2 = arith.cmpi ne, %1, %c0_i32_0 : i32
    scf.if %2 {
      %c0_27 = arith.constant 0 : index
      %c0_28 = arith.constant 0 : index
      %52 = vector.load %arg2[%c0_27, %c0_28] : memref<8x32xf32, #tpu.memory_space<vmem>>, vector<8x32xf32>
      %c0_29 = arith.constant 0 : index
      %c0_30 = arith.constant 0 : index
      %53 = vector.load %arg4[%c0_29, %c0_30] : memref<32x32xf32, #tpu.memory_space<vmem>>, vector<32x32xf32>
      %cst_31 = arith.constant dense<0.000000e+00> : vector<8x32xf32>
      %54 = tpu.matmul %52, %53, %cst_31 {dimension_numbers = #tpu.dot_dimension_numbers<[1], [0], [0], [1], [0, 0, 1, 1], [], []>} : vector<8x32xf32>, vector<32x32xf32>, vector<8x32xf32> -> vector<8x32xf32>
      %c0_32 = arith.constant 0 : index
      %c0_33 = arith.constant 0 : index
      %55 = vector.load %arg9[%c0_32, %c0_33] : memref<8x32xf32, #tpu.memory_space<vmem>>, vector<8x32xf32>
      tpu.vector_store %arg9[%c0_32, %c0_33], %54 {strides = array<i32>} : memref<8x32xf32, #tpu.memory_space<vmem>>, vector<8x32xf32>,
      %cst_34 = arith.constant -1.000000e+30 : f32
      %56 = vector.broadcast %cst_34 : f32 to vector<1x8xf32>
      %c0_35 = arith.constant 0 : index
      %c0_36 = arith.constant 0 : index
      %57 = vector.load %arg10[%c0_35, %c0_36] : memref<1x8xf32, #tpu.memory_space<vmem>>, vector<1x8xf32>
      tpu.vector_store %arg10[%c0_35, %c0_36], %56 {strides = array<i32>} : memref<1x8xf32, #tpu.memory_space<vmem>>, vector<1x8xf32>,
      %cst_37 = arith.constant 0.000000e+00 : f32
      %58 = vector.broadcast %cst_37 : f32 to vector<1x8xf32>
      %c0_38 = arith.constant 0 : index
      %c0_39 = arith.constant 0 : index
      %59 = vector.load %arg11[%c0_38, %c0_39] : memref<1x8xf32, #tpu.memory_space<vmem>>, vector<1x8xf32>
      tpu.vector_store %arg11[%c0_38, %c0_39], %58 {strides = array<i32>} : memref<1x8xf32, #tpu.memory_space<vmem>>, vector<1x8xf32>,
      %cst_40 = arith.constant 0.000000e+00 : f32
      %60 = vector.broadcast %cst_40 : f32 to vector<8x32xf32>
      %c0_41 = arith.constant 0 : index
      %c0_42 = arith.constant 0 : index
      %61 = vector.load %arg12[%c0_41, %c0_42] : memref<8x32xf32, #tpu.memory_space<vmem>>, vector<8x32xf32>
      tpu.vector_store %arg12[%c0_41, %c0_42], %60 {strides = array<i32>} : memref<8x32xf32, #tpu.memory_space<vmem>>, vector<8x32xf32>,
    } else {
    }
    %c0 = arith.constant 0 : index
    %c0_1 = arith.constant 0 : index
    %c0_2 = arith.constant 0 : index
    %3 = vector.load %arg3[%c0, %c0_1, %c0_2] : memref<8x8x32xf32, #tpu.memory_space<vmem>>, vector<8x8x32xf32>
    %c0_3 = arith.constant 0 : index
    %c0_4 = arith.constant 0 : index
    %4 = vector.load %arg9[%c0_3, %c0_4] : memref<8x32xf32, #tpu.memory_space<vmem>>, vector<8x32xf32>
    %5 = vector.shape_cast %4 : vector<8x32xf32> to vector<1x8x32xf32>
    %6 = vector.broadcast %5 : vector<1x8x32xf32> to vector<8x8x32xf32>
    %7 = arith.mulf %3, %6 : vector<8x8x32xf32>
    %cst = arith.constant dense<0.000000e+00> : vector<8x8xf32>
    %8 = vector.multi_reduction <add>, %7, %cst [2] : vector<8x8x32xf32> to vector<8x8xf32>
    %c8_i32 = arith.constant 8 : i32
    %9 = arith.muli %arg1, %c8_i32 : i32
    %10 = tpu.iota {dimensions = array<i32: 0>} : vector<8x8xi32>
    %11 = vector.broadcast %9 : i32 to vector<8x8xi32>
    %12 = arith.addi %11, %10 : vector<8x8xi32>
    %c8_i32_5 = arith.constant 8 : i32
    %13 = vector.broadcast %c8_i32_5 : i32 to vector<8x8xi32>
    %14 = arith.cmpi slt, %12, %13 : vector<8x8xi32>
    %cst_6 = arith.constant -1.000000e+30 : f32
    %15 = vector.broadcast %cst_6 : f32 to vector<8x8xf32>
    %16 = arith.select %14, %8, %15 : vector<8x8xi1>, vector<8x8xf32>
    %c8_i32_7 = arith.constant 8 : i32
    %17 = arith.muli %arg1, %c8_i32_7 : i32
    %18 = tpu.assume_multiple %17, 8 : i32
    %19 = arith.index_cast %18 : i32 to index
    %c0_8 = arith.constant 0 : index
    %20 = vector.load %arg8[%19, %c0_8] : memref<8x8xf32, #tpu.memory_space<vmem>>, vector<8x8xf32>
    tpu.vector_store %arg8[%19, %c0_8], %16 {strides = array<i32>} : memref<8x8xf32, #tpu.memory_space<vmem>>, vector<8x8xf32>,
    %c0_9 = arith.constant 0 : index
    %c0_10 = arith.constant 0 : index
    %21 = vector.load %arg10[%c0_9, %c0_10] : memref<1x8xf32, #tpu.memory_space<vmem>>, vector<1x8xf32>
    %cst_11 = arith.constant dense<0xFF800000> : vector<8xf32>
    %22 = vector.multi_reduction <maximumf>, %16, %cst_11 [0] : vector<8x8xf32> to vector<8xf32>
    %23 = vector.shape_cast %22 : vector<8xf32> to vector<1x8xf32>
    %24 = arith.maximumf %21, %23 : vector<1x8xf32>
    %25 = arith.subf %21, %24 : vector<1x8xf32>
    %26 = math.exp %25 : vector<1x8xf32>
    %27 = vector.broadcast %24 : vector<1x8xf32> to vector<8x8xf32>
    %28 = arith.subf %16, %27 : vector<8x8xf32>
    %29 = math.exp %28 : vector<8x8xf32>
    %c0_12 = arith.constant 0 : index
    %c0_13 = arith.constant 0 : index
    %30 = vector.load %arg11[%c0_12, %c0_13] : memref<1x8xf32, #tpu.memory_space<vmem>>, vector<1x8xf32>
    %31 = arith.mulf %26, %30 : vector<1x8xf32>
    %cst_14 = arith.constant dense<0.000000e+00> : vector<8xf32>
    %32 = vector.multi_reduction <add>, %29, %cst_14 [0] : vector<8x8xf32> to vector<8xf32>
    %33 = vector.shape_cast %32 : vector<8xf32> to vector<1x8xf32>
    %34 = arith.addf %31, %33 : vector<1x8xf32>
    %c0_15 = arith.constant 0 : index
    %c0_16 = arith.constant 0 : index
    %35 = vector.load %arg11[%c0_15, %c0_16] : memref<1x8xf32, #tpu.memory_space<vmem>>, vector<1x8xf32>
    tpu.vector_store %arg11[%c0_15, %c0_16], %34 {strides = array<i32>} : memref<1x8xf32, #tpu.memory_space<vmem>>, vector<1x8xf32>,
    %36 = vector.shape_cast %26 : vector<1x8xf32> to vector<1x8x1xf32>
    %c0_17 = arith.constant 0 : index
    %c0_18 = arith.constant 0 : index
    %37 = vector.load %arg12[%c0_17, %c0_18] : memref<8x32xf32, #tpu.memory_space<vmem>>, vector<8x32xf32>
    %38 = vector.shape_cast %37 : vector<8x32xf32> to vector<1x8x32xf32>
    %39 = vector.broadcast %36 : vector<1x8x1xf32> to vector<1x8x32xf32>
    %40 = arith.mulf %39, %38 : vector<1x8x32xf32>
    %cst_19 = arith.constant dense<0.000000e+00> : vector<8x32xf32>
    %41 = vector.multi_reduction <add>, %40, %cst_19 [0] : vector<1x8x32xf32> to vector<8x32xf32>
    %42 = vector.shape_cast %29 : vector<8x8xf32> to vector<8x8x1xf32>
    %43 = vector.broadcast %42 : vector<8x8x1xf32> to vector<8x8x32xf32>
    %44 = arith.mulf %43, %3 : vector<8x8x32xf32>
    %cst_20 = arith.constant dense<0.000000e+00> : vector<8x32xf32>
    %45 = vector.multi_reduction <add>, %44, %cst_20 [0] : vector<8x8x32xf32> to vector<8x32xf32>
    %46 = arith.addf %41, %45 : vector<8x32xf32>
    %c0_21 = arith.constant 0 : index
    %c0_22 = arith.constant 0 : index
    %47 = vector.load %arg12[%c0_21, %c0_22] : memref<8x32xf32, #tpu.memory_space<vmem>>, vector<8x32xf32>
    tpu.vector_store %arg12[%c0_21, %c0_22], %46 {strides = array<i32>} : memref<8x32xf32, #tpu.memory_space<vmem>>, vector<8x32xf32>,
    %c0_23 = arith.constant 0 : index
    %c0_24 = arith.constant 0 : index
    %48 = vector.load %arg10[%c0_23, %c0_24] : memref<1x8xf32, #tpu.memory_space<vmem>>, vector<1x8xf32>
    tpu.vector_store %arg10[%c0_23, %c0_24], %24 {strides = array<i32>} : memref<1x8xf32, #tpu.memory_space<vmem>>, vector<1x8xf32>,
    %c0_i32_25 = arith.constant 0 : i32
    %49 = arith.cmpi eq, %arg1, %c0_i32_25 : i32
    %50 = arith.extui %49 : i1 to i32
    %c0_i32_26 = arith.constant 0 : i32
    %51 = arith.cmpi ne, %50, %c0_i32_26 : i32
    scf.if %51 {
      %c0_27 = arith.constant 0 : index
      %c0_28 = arith.constant 0 : index
      %52 = vector.load %arg11[%c0_27, %c0_28] : memref<1x8xf32, #tpu.memory_space<vmem>>, vector<1x8xf32>
      %53 = tpu.reciprocal %52 {approx = true} : vector<1x8xf32> -> vector<1x8xf32>
      %54 = arith.mulf %52, %53 : vector<1x8xf32>
      %cst_29 = arith.constant 2.000000e+00 : f32
      %55 = vector.broadcast %cst_29 : f32 to vector<1x8xf32>
      %56 = arith.subf %55, %54 : vector<1x8xf32>
      %57 = arith.mulf %53, %56 : vector<1x8xf32>
      %c0_30 = arith.constant 0 : index
      %c0_31 = arith.constant 0 : index
      %58 = vector.load %arg8[%c0_30, %c0_31] : memref<8x8xf32, #tpu.memory_space<vmem>>, vector<8x8xf32>
      %c0_32 = arith.constant 0 : index
      %c0_33 = arith.constant 0 : index
      %59 = vector.load %arg10[%c0_32, %c0_33] : memref<1x8xf32, #tpu.memory_space<vmem>>, vector<1x8xf32>
      %60 = vector.broadcast %59 : vector<1x8xf32> to vector<8x8xf32>
      %61 = arith.subf %58, %60 : vector<8x8xf32>
      %62 = math.exp %61 : vector<8x8xf32>
      %63 = vector.broadcast %57 : vector<1x8xf32> to vector<8x8xf32>
      %64 = arith.mulf %62, %63 : vector<8x8xf32>
      %c0_34 = arith.constant 0 : index
      %c0_35 = arith.constant 0 : index
      %65 = vector.load %arg8[%c0_34, %c0_35] : memref<8x8xf32, #tpu.memory_space<vmem>>, vector<8x8xf32>
      tpu.vector_store %arg8[%c0_34, %c0_35], %64 {strides = array<i32>} : memref<8x8xf32, #tpu.memory_space<vmem>>, vector<8x8xf32>,
      %66 = vector.shape_cast %57 : vector<1x8xf32> to vector<1x8x1xf32>
      %c0_36 = arith.constant 0 : index
      %c0_37 = arith.constant 0 : index
      %67 = vector.load %arg12[%c0_36, %c0_37] : memref<8x32xf32, #tpu.memory_space<vmem>>, vector<8x32xf32>
      %68 = vector.shape_cast %67 : vector<8x32xf32> to vector<1x8x32xf32>
      %69 = vector.broadcast %66 : vector<1x8x1xf32> to vector<1x8x32xf32>
      %70 = arith.mulf %69, %68 : vector<1x8x32xf32>
      %cst_38 = arith.constant dense<0.000000e+00> : vector<8x32xf32>
      %71 = vector.multi_reduction <add>, %70, %cst_38 [0] : vector<1x8x32xf32> to vector<8x32xf32>
      %c0_39 = arith.constant 0 : index
      %c0_40 = arith.constant 0 : index
      %72 = vector.load %arg5[%c0_39, %c0_40] : memref<32x32xf32, #tpu.memory_space<vmem>>, vector<32x32xf32>
      %cst_41 = arith.constant dense<0.000000e+00> : vector<8x32xf32>
      %73 = tpu.matmul %71, %72, %cst_41 {dimension_numbers = #tpu.dot_dimension_numbers<[1], [0], [0], [1], [0, 0, 1, 1], [], []>} : vector<8x32xf32>, vector<32x32xf32>, vector<8x32xf32> -> vector<8x32xf32>
      %c0_42 = arith.constant 0 : index
      %c0_43 = arith.constant 0 : index
      %74 = vector.load %arg6[%c0_42, %c0_43] : memref<32x32xf32, #tpu.memory_space<vmem>>, vector<32x32xf32>
      %cst_44 = arith.constant dense<0.000000e+00> : vector<8x32xf32>
      %75 = tpu.matmul %4, %74, %cst_44 {dimension_numbers = #tpu.dot_dimension_numbers<[1], [0], [0], [1], [0, 0, 1, 1], [], []>} : vector<8x32xf32>, vector<32x32xf32>, vector<8x32xf32> -> vector<8x32xf32>
      %76 = arith.addf %73, %75 : vector<8x32xf32>
      %c0_45 = arith.constant 0 : index
      %c0_46 = arith.constant 0 : index
      %77 = vector.load %arg7[%c0_45, %c0_46] : memref<8x32xf32, #tpu.memory_space<vmem>>, vector<8x32xf32>
      tpu.vector_store %arg7[%c0_45, %c0_46], %76 {strides = array<i32>} : memref<8x32xf32, #tpu.memory_space<vmem>>, vector<8x32xf32>,
    } else {
    }
    return
  }
  func.func @transform_0(%arg0: i32, %arg1: i32) -> (i32, i32) {
    %c0_i32 = arith.constant 0 : i32
    %c0_i32_0 = arith.constant 0 : i32
    return %arg0, %c0_i32 : i32, i32
  }
  func.func @transform_1(%arg0: i32, %arg1: i32) -> (i32, i32, i32) {
    %c0_i32 = arith.constant 0 : i32
    %c0_i32_0 = arith.constant 0 : i32
    return %arg1, %arg0, %c0_i32 : i32, i32, i32
  }
  func.func @transform_2(%arg0: i32, %arg1: i32) -> (i32, i32) {
    %c0_i32 = arith.constant 0 : i32
    %c0_i32_0 = arith.constant 0 : i32
    %c0_i32_1 = arith.constant 0 : i32
    return %c0_i32, %c0_i32_0 : i32, i32
  }
  func.func @transform_3(%arg0: i32, %arg1: i32) -> (i32, i32) {
    %c0_i32 = arith.constant 0 : i32
    %c0_i32_0 = arith.constant 0 : i32
    %c0_i32_1 = arith.constant 0 : i32
    return %c0_i32, %c0_i32_0 : i32, i32
  }
  func.func @transform_4(%arg0: i32, %arg1: i32) -> (i32, i32) {
    %c0_i32 = arith.constant 0 : i32
    %c0_i32_0 = arith.constant 0 : i32
    %c0_i32_1 = arith.constant 0 : i32
    return %c0_i32, %c0_i32_0 : i32, i32
  }
  func.func @transform_5(%arg0: i32, %arg1: i32) -> (i32, i32) {
    %c0_i32 = arith.constant 0 : i32
    %c0_i32_0 = arith.constant 0 : i32
    return %arg0, %c0_i32 : i32, i32
  }
  func.func @transform_6(%arg0: i32, %arg1: i32) -> (i32, i32) {
    %c0_i32 = arith.constant 0 : i32
    %c0_i32_0 = arith.constant 0 : i32
    return %c0_i32, %arg0 : i32, i32
  }
}

</mosaic_0001>

<bundles_post_ra>
// kernel: attn_forward.1
= control target key start
LH: loop header
LB: loop body
LE: loop exit
PB: predicated region body
PF: predicated region fallthrough
CT: control target
= control target key end

     0   :  { %vm31_vm0 = vcmask 261120   ;;  %v628_v0 = vmov 0.0|0.0   ;;  %vm629_vm1 = vmmov 0   ;;  %v630_v4 = vmov 0.0   ;;  %s831_s2 = inlined_call_operand.vmem [shape: f32[32,32], index: 2, kind: input, shape index: {}]   ;;  %s832_s0 = inlined_call_operand.vmem [shape: f32[8,32], index: 0, kind: input, shape index: {}]   ;;  %s833_s4 = inlined_call_operand.vmem [shape: f32[32,32], index: 4, kind: input, shape index: {}]   ;;  %s834_s1 = inlined_call_operand.vmem [shape: f32[8,8,32], index: 1, kind: input, shape index: {}]   ;;  %s835_s6 = inlined_call_operand.vmem [shape: f32[8,8], index: 6, kind: output, shape index: {1}]   ;;  %s836_s3 = inlined_call_operand.vmem [shape: f32[32,32], index: 3, kind: input, shape index: {}]   ;;  %s837_s5 = inlined_call_operand.vmem [shape: f32[8,32], index: 5, kind: output, shape index: {0}]  }
   0x1   :  { %596 = vmatprep.subr.bf16.mxu0 %v628_v0  ;;  %v27_v1 = vld [vmem:[%s831_s2] sm:$0xff]  ;;  %v28_v2 = vld [vmem:[%s831_s2 + $0x8] sm:$0xff]  ;;  %v29_v3 = vld [vmem:[%s831_s2 + $0x10] sm:$0xff]  ;;  %571 = vmatprep.mubr.msk.f32.mxu0 %vm629_vm1, %v630_v4  ;;  %vm106_vm2 = vcmask 57344   ;;  %109 = vst.msk [vmem:[#allocation5] sm:$0xff] %vm31_vm0, %v630_v4  ;;  %v166_v43 = vlaneseq  ;;  %vm200_vm3 = vcmask 1041409  }
   0x2   :  { %v597_v5 = vpack.c.bf16 %v28_v2, %v27_v1  ;;  %v30_v6 = vld [vmem:[%s831_s2 + $0x18] sm:$0xff]  ;;  %v631_v7 = vmov -1e+30   ;;  %108 = vst.msk [vmem:[#allocation4] sm:$0x1] %vm106_vm2, %v630_v4  ;;  %602 = vmatprep.subr.bf16.mxu1 %v628_v0  ;;  %582 = vmatprep.mubr.msk.f32.mxu1 %vm629_vm1, %v630_v4  ;;  %v26_v9 = vld [vmem:[%s832_s0] sm:$0xff] }
   0x3   :  { %107 = vst.msk [vmem:[#allocation3] sm:$0x1] %vm106_vm2, %v631_v7  ;;  %v600_v8 = vpack.c.bf16 %v30_v6, %v29_v3  ;;  %v385_v10 = vld [vmem:[%s833_s4] sm:$0xff]  ;;  %v386_v11 = vld [vmem:[%s833_s4 + $0x8] sm:$0xff]  ;;  %v387_v13 = vld [vmem:[%s833_s4 + $0x10] sm:$0xff]  ;;  %v167_v44 = vand.u32 127, %v166_v43 }
   0x4   :  { %598 = vmatpush3.bf16.msra.mxu0 %v597_v5  ;;  %v603_v12 = vpack.c.bf16 %v386_v11, %v385_v10  ;;  %v388_v14 = vld [vmem:[%s833_s4 + $0x18] sm:$0xff]  ;;  %v709_v18 = vld [vmem:[%s834_s1 + $0x10] sm:$0xff]  ;;  %v714_v19 = vld [vmem:[%s834_s1] sm:$0xff]  ;;  %v764_v45 = vshrl.u32 %v166_v43, 7  ;;  %vm202_vm4 = vcmask 1042434   ;;  %vm204_vm5 = vcmask 1043459  }
   0x5   :  { %599 = vmatprep.subr.bf16.mxu0 %v628_v0  ;;  %v606_v15 = vpack.c.bf16 %v388_v14, %v387_v13  ;;  %v719_v21 = vld [vmem:[%s834_s1 + $0x18] sm:$0xff]  ;;  %v724_v22 = vld [vmem:[%s834_s1 + $0x8] sm:$0xff]  ;;  %v742_v30 = vld [vmem:[%s834_s1 + $0x20] sm:$0xff]  ;;  %vm206_vm6 = vcmask 1044484   ;;  %vm208_vm7 = vcmask 1045509   ;;  %vm210_vm8 = vcmask 1046534  }
   0x6   :  { %604 = vmatpush3.bf16.msra.mxu1 %v603_v12  ;;  %v737_v29 = vld [vmem:[%s834_s1 + $0x28] sm:$0xff]  ;;  %v751_v35 = vld [vmem:[%s834_s1 + $0x38] sm:$0xff]  ;;  %v756_v36 = vld [vmem:[%s834_s1 + $0x30] sm:$0xff]  ;;  %v170_v48 = vsub.s32 %v167_v44, %v764_v45  ;;  %vm212_vm9 = vcmask 1047559   ;;  %vm217_vm10 = vcmask 64512   ;;  %v773_v14 = vsub.s32 0, %v764_v45 }
   0x7   :  { %605 = vmatprep.subr.bf16.mxu1 %v628_v0 }
   0x8   :  { %601 = vmatpush3.bf16.msra.mxu0 %v600_v8 }
   0xa   :  { %607 = vmatpush3.bf16.msra.mxu1 %v606_v15  ;;  %v219_v13 = vld [vmem:[#allocation3] sm:$0x1] }
   0xb   :  { %572 = vmatmul.mubr.msk.f32.vlgmr.msra.gmra.mrb[0].mxu0 %vm31_vm0, %v26_v9  ;;  %608 = vmatprep.subr.bf16.mxu1 %v628_v0 }
  0xde   :  { %v101_v16 = vpop.f32.mrb[0].mxu0 }
  0xdf   :  { %105 = vst.msk [vmem:[#allocation2] sm:$0xff] %vm31_vm0, %v101_v16  ;;  %v573_v17 = vpop.f32.mrb[1].mxu0 }
  0xe6   :  { %v118_v20 = vld [vmem:[#allocation2] sm:$0xff] }
  0xe7   :  { %583 = vmatmul.mubr.msk.f32.vlgmr.msra.gmra.mrb[0].mxu1 %vm31_vm0, %v118_v20  ;;  %v121_v23 = vmul.f32 %v118_v20, %v709_v18  ;;  %v119_v24 = vmul.f32 %v118_v20, %v714_v19  ;;  %v122_v27 = vmul.f32 %v118_v20, %v719_v21  ;;  %v120_v28 = vmul.f32 %v118_v20, %v724_v22 }
  0xe8   :  { %593 = vmatprep.mubr.msk.f32.mxu1 %vm629_vm1, %v630_v4  ;;  %v124_v33 = vmul.f32 %v118_v20, %v737_v29  ;;  %v123_v34 = vmul.f32 %v118_v20, %v742_v30  ;;  %v126_v39 = vmul.f32 %v118_v20, %v751_v35  ;;  %v125_v40 = vmul.f32 %v118_v20, %v756_v36 }
  0xe9   :  { %v134_v25 = vsel %vm31_vm0, %v121_v23, 0.0  ;;  %v128_v26 = vsel %vm31_vm0, %v119_v24, 0.0  ;;  %v137_v31 = vsel %vm31_vm0, %v122_v27, 0.0  ;;  %v131_v32 = vsel %vm31_vm0, %v120_v28, 0.0 }
  0xea   :  { %135 = vadd.xlane.f32.xlu1 %v134_v25  ;;  %129 = vadd.xlane.f32.xlu0 %v128_v26  ;;  %v143_v37 = vsel %vm31_vm0, %v124_v33, 0.0  ;;  %v140_v38 = vsel %vm31_vm0, %v123_v34, 0.0  ;;  %v149_v41 = vsel %vm31_vm0, %v126_v39, 0.0  ;;  %v146_v42 = vsel %vm31_vm0, %v125_v40, 0.0 }
  0xeb   :  { %v271_v26 = vsub.s32 1, %v764_v45  ;;  %v278_v28 = vsub.s32 2, %v764_v45  ;;  %v292_v34 = vsub.s32 4, %v764_v45 }
  0xee   :  { %138 = vadd.xlane.f32.xlu1 %v137_v31  ;;  %132 = vadd.xlane.f32.xlu0 %v131_v32 }
  0xf2   :  { %144 = vadd.xlane.f32.xlu1 %v143_v37  ;;  %141 = vadd.xlane.f32.xlu0 %v140_v38 }
  0xf6   :  { %150 = vadd.xlane.f32.xlu1 %v149_v41  ;;  %147 = vadd.xlane.f32.xlu0 %v146_v42  ;;  %v285_v41 = vsub.s32 3, %v764_v45  ;;  %v306_v42 = vsub.s32 6, %v764_v45 }
 0x177   :  { %v136_v46 = vpop.xlane.xlu1 %135  ;;  %v130_v47 = vpop.xlane.xlu0 %129 }
 0x178   :  { %v171_v51 = vrot.slane %v130_v47, %v170_v48  ;;  %v179_v53 = vrot.slane %v136_v46, %v170_v48 }
 0x17b   :  { %v139_v49 = vpop.xlane.xlu1 %138  ;;  %v133_v50 = vpop.xlane.xlu0 %132 }
 0x17c   :  { %v175_v52 = vrot.slane %v133_v50, %v170_v48  ;;  %v183_v54 = vrot.slane %v139_v49, %v170_v48  ;;  %v299_v49 = vsub.s32 5, %v764_v45  ;;  %v240_v50 = vld [vmem:[#allocation4] sm:$0x1] }
 0x17e   :  { %v201_v55 = vsel %vm200_vm3, %v175_v52, %v171_v51 }
 0x17f   :  { %v203_v56 = vsel %vm202_vm4, %v179_v53, %v201_v55  ;;  %v145_v57 = vpop.xlane.xlu1 %144  ;;  %v142_v58 = vpop.xlane.xlu0 %141 }
 0x180   :  { %v205_v59 = vsel %vm204_vm5, %v183_v54, %v203_v56  ;;  %v187_v60 = vrot.slane %v142_v58, %v170_v48  ;;  %v191_v61 = vrot.slane %v145_v57, %v170_v48  ;;  %v313_v56 = vsub.s32 7, %v764_v45  ;;  %v381_v58 = vld [vmem:[%s836_s3] sm:$0xff]  ;;  %v384_v45 = vld [vmem:[%s836_s3 + $0x18] sm:$0xff] }
 0x182   :  { %v207_v62 = vsel %vm206_vm6, %v187_v60, %v205_v59  ;;  %v382_v59 = vld [vmem:[%s836_s3 + $0x8] sm:$0xff]  ;;  %v383_v60 = vld [vmem:[%s836_s3 + $0x10] sm:$0xff] }
 0x183   :  { %v151_v63 = vpop.xlane.xlu1 %150  ;;  %v148_v1 = vpop.xlane.xlu0 %147  ;;  %v209_v4 = vsel %vm208_vm7, %v191_v61, %v207_v62  ;;  %v609_v61 = vpack.c.bf16 %v382_v59, %v381_v58 }
 0x184   :  { %v199_v2 = vrot.slane %v151_v63, %v170_v48  ;;  %v195_v3 = vrot.slane %v148_v1, %v170_v48  ;;  %v612_v63 = vpack.c.bf16 %v384_v45, %v383_v60 }
 0x185   :  { %610 = vmatpush3.bf16.msra.mxu1 %v609_v61 }
 0x186   :  { %v211_v5 = vsel %vm210_vm8, %v195_v3, %v209_v4  ;;  %611 = vmatprep.subr.bf16.mxu1 %v628_v0 }
 0x187   :  { %v213_v6 = vsel %vm212_vm9, %v199_v2, %v211_v5 }
 0x188   :  { %218 = vst.msk [vmem:[%s835_s6] sm:$0xff] %vm217_vm10, %v213_v6  ;;  %v220_v7 = vsel %vm217_vm10, %v213_v6, -inf }
 0x189   :  { %v221_v8 = vrot.slane %v220_v7, 4  ;;  %613 = vmatpush3.bf16.msra.mxu1 %v612_v63 }
 0x18b   :  { %v222_v9 = vmax.f32 %v220_v7, %v221_v8 }
 0x18d   :  { %v223_v10 = vrot.slane %v222_v9, 2 }
 0x18f   :  { %v224_v11 = vmax.f32 %v222_v9, %v223_v10  ;;  %v352_v2 = vld [vmem:[%s835_s6] sm:$0xff] }
 0x191   :  { %v225_v12 = vrot.slane %v224_v11, 1 }
 0x193   :  { %v226_v15 = vmax.f32 %v224_v11, %v225_v12 }
 0x195   :  { %v227_v16 = vmax.f32 %v219_v13, %v226_v15 }
 0x197   :  { %v235_v17 = vrot.slane %v227_v16, %v773_v14  ;;  %343 = vst.msk [vmem:[#allocation3] sm:$0x1] %vm106_vm2, %v227_v16  ;;  %v228_v24 = vsub.f32 %v219_v13, %v227_v16 }
 0x199   :  { %v237_v20 = vsub.f32 %v213_v6, %v235_v17  ;;  %v229_v25 = vmul.f32 1.442695, %v228_v24 }
 0x19b   :  { %v238_v23 = vmul.f32 1.442695, %v237_v20 }
 0x19d   :  { %620 = vpow2.f32 %v238_v23 }
 0x19e   :  { %622 = vpow2.f32 %v229_v25  ;;  %v545_v1 = vld [vmem:[#allocation3] ss:$0 sm:$0xff] }
 0x19f   :  { %v360_v4 = vsub.f32 %v352_v2, %v545_v1 }
 0x1a1   :  { %v361_v5 = vmul.f32 1.442695, %v360_v4 }
 0x1a7   :  { %v621_v27 = vpop.eup %620 }
 0x1a8   :  { %v242_v31 = vsel %vm217_vm10, %v621_v27, 0.0  ;;  %v272_v32 = vrot.slane %v621_v27, %v271_v26  ;;  %v265_v33 = vrot.slane %v621_v27, %v773_v14  ;;  %v279_v39 = vrot.slane %v621_v27, %v278_v28  ;;  %v623_v46 = vpop.eup %622 }
 0x1a9   :  { %v243_v37 = vrot.slane %v242_v31, 4  ;;  %v293_v40 = vrot.slane %v621_v27, %v292_v34  ;;  %v286_v47 = vrot.slane %v621_v27, %v285_v41  ;;  %v307_v48 = vrot.slane %v621_v27, %v306_v42 }
 0x1aa   :  { %274 = vbcast.lane.b32.xlu1 %v272_v32, 256  ;;  %267 = vbcast.lane.b32.xlu0 %v265_v33, 256  ;;  %v241_v53 = vmul.f32 %v623_v46, %v240_v50  ;;  %v300_v54 = vrot.slane %v621_v27, %v299_v49  ;;  %v255_v55 = vrot.slane %v623_v46, %v773_v14 }
 0x1ab   :  { %v244_v38 = vadd.f32 %v243_v37, %v242_v31  ;;  %v314_v62 = vrot.slane %v621_v27, %v313_v56 }
 0x1ad   :  { %v245_v43 = vrot.slane %v244_v38, 2 }
 0x1ae   :  { %281 = vbcast.lane.b32.xlu1 %v279_v39, 256  ;;  %295 = vbcast.lane.b32.xlu0 %v293_v40, 256 }
 0x1af   :  { %v246_v44 = vadd.f32 %v245_v43, %v244_v38 }
 0x1b1   :  { %v247_v51 = vrot.slane %v246_v44, 1 }
 0x1b2   :  { %288 = vbcast.lane.b32.xlu1 %v286_v47, 256  ;;  %309 = vbcast.lane.b32.xlu0 %v307_v48, 256 }
 0x1b3   :  { %v248_v52 = vadd.f32 %v247_v51, %v246_v44 }
 0x1b5   :  { %v249_v57 = vadd.f32 %v248_v52, %v241_v53 }
 0x1b6   :  { %302 = vbcast.lane.b32.xlu1 %v300_v54, 256  ;;  %257 = vbcast.lane.b32.xlu0 %v255_v55, 256 }
 0x1b7   :  { %251 = vst.msk [vmem:[#allocation4] sm:$0x1] %vm106_vm2, %v249_v57 }
 0x1ba   :  { %316 = vbcast.lane.b32.xlu1 %v314_v62, 256 }
 0x1be   :  { %v347_v3 = vld [vmem:[#allocation4] sm:$0x1] }
 0x1bf   :  { %624 = vrcp.f32 %v347_v3 }
 0x1c0   :  { %626 = vpow2.f32 %v361_v5 }
 0x1c9   :  { %v625_v6 = vpop.eup %624 }
 0x1ca   :  { %v349_v7 = vmul.f32 %v625_v6, %v347_v3  ;;  %v627_v11 = vpop.eup %626 }
 0x1cc   :  { %v350_v8 = vsub.f32 2.0, %v349_v7 }
 0x1ce   :  { %v351_v9 = vmul.f32 %v625_v6, %v350_v8 }
 0x1d0   :  { %v367_v10 = vrot.slane %v351_v9, %v773_v14 }
 0x1d2   :  { %376 = vbcast.lane.b32.xlu1 %v367_v10, 256  ;;  %v369_v0 = vmul.f32 %v627_v11, %v367_v10 }
 0x1d4   :  { %370 = vst.msk [vmem:[%s835_s6] sm:$0xff] %vm217_vm10, %v369_v0 }
 0x21c   :  { %v275_v12 = vpop.permute.xlu1 %274  ;;  %v268_v13 = vpop.permute.xlu0 %267 }
 0x21d   :  { %v319_v15 = vmul.f32 %v275_v12, %v724_v22  ;;  %v318_v16 = vmul.f32 %v268_v13, %v714_v19 }
 0x21f   :  { %v327_v23 = vsel %vm31_vm0, %v319_v15, 0.0  ;;  %v326_v14 = vsel %vm31_vm0, %v318_v16, 0.0 }
 0x220   :  { %v282_v17 = vpop.permute.xlu1 %281  ;;  %v296_v20 = vpop.permute.xlu0 %295  ;;  %v328_v26 = vadd.f32 %v327_v23, %v326_v14 }
 0x221   :  { %v320_v24 = vmul.f32 %v282_v17, %v709_v18  ;;  %v322_v28 = vmul.f32 %v296_v20, %v742_v30 }
 0x223   :  { %v329_v25 = vsel %vm31_vm0, %v320_v24, 0.0  ;;  %v333_v37 = vsel %vm31_vm0, %v322_v28, 0.0 }
 0x224   :  { %v289_v27 = vpop.permute.xlu1 %288  ;;  %v330_v32 = vadd.f32 %v329_v25, %v328_v26  ;;  %v310_v22 = vpop.permute.xlu0 %309 }
 0x225   :  { %v321_v31 = vmul.f32 %v289_v27, %v719_v21  ;;  %v324_v38 = vmul.f32 %v310_v22, %v756_v36  ;;  %v259_v21 = vld [vmem:[#allocation5] sm:$0xff] }
 0x227   :  { %v331_v19 = vsel %vm31_vm0, %v321_v31, 0.0  ;;  %v337_v30 = vsel %vm31_vm0, %v324_v38, 0.0 }
 0x228   :  { %v332_v33 = vadd.f32 %v331_v19, %v330_v32  ;;  %v303_v34 = vpop.permute.xlu1 %302  ;;  %v258_v43 = vpop.permute.xlu0 %257 }
 0x229   :  { %v323_v18 = vmul.f32 %v303_v34, %v737_v29  ;;  %v260_v48 = vmul.f32 %v259_v21, %v258_v43 }
 0x22a   :  { %v334_v39 = vadd.f32 %v333_v37, %v332_v33 }
 0x22b   :  { %v335_v40 = vsel %vm31_vm0, %v323_v18, 0.0 }
 0x22c   :  { %v336_v41 = vadd.f32 %v335_v40, %v334_v39  ;;  %v317_v42 = vpop.permute.xlu1 %316 }
 0x22d   :  { %v325_v44 = vmul.f32 %v317_v42, %v751_v35 }
 0x22e   :  { %v338_v46 = vadd.f32 %v337_v30, %v336_v41 }
 0x22f   :  { %v339_v47 = vsel %vm31_vm0, %v325_v44, 0.0 }
 0x230   :  { %v340_v49 = vadd.f32 %v339_v47, %v338_v46 }
 0x232   :  { %v341_v50 = vadd.f32 %v340_v49, %v260_v48 }
 0x234   :  { %342 = vst.msk [vmem:[#allocation5] sm:$0xff] %vm31_vm0, %v341_v50 }
 0x23b   :  { %v378_v29 = vld [vmem:[#allocation5] sm:$0xff] }
 0x244   :  { %v377_v36 = vpop.permute.xlu1 %376 }
 0x245   :  { %v379_v51 = vmul.f32 %v378_v29, %v377_v36 }
 0x247   :  { %594 = vmatmul.mubr.msk.f32.vlgmr.msra.gmra.mrb[0].mxu1 %vm31_vm0, %v379_v51 }
 0x31a   :  { %v531_v52 = vpop.f32.mrb[0].mxu1 }
 0x31b   :  { %535 = vst.msk [vmem:[%s837_s5] sm:$0xff] %vm31_vm0, %v531_v52  ;;  %v595_v35 = vpop.f32.mrb[1].mxu1 }

</bundles_post_ra>
